<compile_context>
chip_gen: v5e
topology: v5e:2x2
jax: 0.10.0
libtpu: 0.0.40
codegen_flags: <defaults>
</compile_context>

<pallas_src>
import functools

import jax
import jax.numpy as jnp
from jax.experimental import pallas as pl
from jax.experimental.pallas import tpu as pltpu


def _pdp_linear_kernel(thr_ref, x_ref, w_ref, b_ref, o_ref, mw_ref, *,
                       inv_tau, compute_dtype, mask_dtype):
    """Computes one (tm, tn) output tile.

    thr_ref: (1, 1)  f32 SMEM            -- pruning threshold
    x_ref:   (tm, K) compute_dtype VMEM  -- activation tile (cast in the wrapper)
    w_ref:   (tn, K) f32 VMEM            -- weight tile (out_features x in_features)
    b_ref:   (1, tn) f32 VMEM            -- bias tile
    o_ref:   (tm, tn) VMEM               -- output tile
    mw_ref:  (tn, K) compute_dtype VMEM scratch -- masked weight, resident across m tiles
    """
    m = pl.program_id(1)  # batch-tile index (innermost); weight block fixed across it.

    @pl.when(m == 0)
    def _():
        # Soft mask: sigmoid((|W| - threshold) * (1/tau)), in mask_dtype.
        w = w_ref[...].astype(mask_dtype)
        thr = thr_ref[0, 0].astype(mask_dtype)
        mask = jax.nn.sigmoid((jnp.abs(w) - thr) * inv_tau)
        mw_ref[...] = (w * mask).astype(compute_dtype)

    # x @ (W * mask).T as a K-contraction on the last dim of BOTH operands
    # (no in-kernel transpose); low-precision operands, f32 MXU accumulation.
    acc = jax.lax.dot_general(
        x_ref[...], mw_ref[...],
        dimension_numbers=(((1,), (1,)), ((), ())),
        preferred_element_type=jnp.float32)
    o_ref[...] = (acc + b_ref[...]).astype(o_ref.dtype)


def compute_pdp_threshold(weight, target_sparsity):
    """kth-smallest of |W|, k = int(numel * target_sparsity).  Cacheable glue."""
    num_prune = int(weight.size * target_sparsity)
    if num_prune == 0:
        return jnp.zeros((), jnp.float32)
    flat = jnp.sort(jnp.abs(weight).astype(jnp.float32).reshape(-1))
    return flat[num_prune - 1]


def pdp_linear(x, weight, bias, *, tau=0.02, target_sparsity=0.5,
               threshold=None, block_m=256, block_n=256,
               compute_dtype=jnp.bfloat16, mask_dtype=jnp.float32,
               out_dtype=jnp.float32):
    """PDPLinear forward.  x: (B, K), weight: (N, K), bias: (N,) -> (B, N) out_dtype."""
    B, K = x.shape
    N, K2 = weight.shape
    assert K == K2 and bias.shape == (N,)

    # --- threshold glue (depends only on W; pass a cached value via `threshold=`) ---
    if threshold is None:
        threshold = compute_pdp_threshold(weight, target_sparsity)
    thr_smem = jnp.asarray(threshold, jnp.float32).reshape(1, 1)

    bias2d = bias.astype(jnp.float32).reshape(1, N)

    # Cast the re-streamed operand ONCE outside the kernel (halves its HBM traffic and
    # removes the per-inner-step cast).
    x_in = x if x.dtype == compute_dtype else x.astype(compute_dtype)

    # Tile sizes: lane-dense output (tn multiple of 128; 256 matches v6e/v7x MXU),
    # sublane-aligned batch tile; fall back to the full dim for small shapes.
    tm = B if B <= block_m else block_m
    tn = N if N <= block_n else block_n
    grid = (pl.cdiv(N, tn), pl.cdiv(B, tm))  # (n outer, m inner) -> weight resident over m

    # Scoped-VMEM budget from the actual tile footprint (+25% margin, >= 32 MiB).
    cbytes = jnp.dtype(compute_dtype).itemsize
    obytes = jnp.dtype(out_dtype).itemsize
    wbytes = jnp.dtype(weight.dtype).itemsize
    footprint = (2 * tm * K * cbytes                # x tile, double-buffered
                 + 2 * tn * K * wbytes              # weight tile, double-buffered
                 + tn * K * cbytes                  # masked-weight scratch
                 + 2 * max(tm, 8) * tn * obytes     # output tile, double-buffered
                 + 2 * 8 * tn * 4)                  # bias tile (sublane-padded)
    vmem_limit = max(int(footprint * 1.25) + (1 << 20), 32 << 20)
    # TODO(synk): on v7x (64 MiB physical VMEM) with very large K, add a K grid axis
    # ("arbitrary") with an f32 accumulator + pl.when init/finalize, or mask the weight in
    # K chunks via manual pltpu.make_async_copy from memory_space=pl.ANY; optionally use
    # pipeline_mode=pl.Buffered(1) on the weight spec (only read at m == 0) when B/tm is
    # large to drop one f32 weight buffer.
    # TODO(synk): for batch-heavy shapes (B*K >> N*K) flip the resident operand (keep x
    # stationary, stream the weight) or add an outer M chunk to avoid x re-streaming per
    # N tile.

    kernel = functools.partial(_pdp_linear_kernel,
                               inv_tau=float(1.0 / tau),
                               compute_dtype=compute_dtype,
                               mask_dtype=mask_dtype)

    out = pl.pallas_call(
        kernel,
        out_shape=jax.ShapeDtypeStruct((B, N), out_dtype),
        grid=grid,
        in_specs=[
            pl.BlockSpec(memory_space=pltpu.SMEM),            # threshold scalar
            pl.BlockSpec((tm, K), lambda n, m: (m, 0)),       # x tile (re-streamed per n)
            pl.BlockSpec((tn, K), lambda n, m: (n, 0)),       # weight tile (resident over m)
            pl.BlockSpec((1, tn), lambda n, m: (0, n)),       # bias tile
        ],
        out_specs=pl.BlockSpec((tm, tn), lambda n, m: (m, n)),
        scratch_shapes=[pltpu.VMEM((tn, K), compute_dtype)],  # masked weight tile
        compiler_params=pltpu.CompilerParams(
            dimension_semantics=("parallel", "arbitrary"),
            vmem_limit_bytes=vmem_limit),
    )(thr_smem, x_in, weight, bias2d)
    return out


def _reference(x, weight, bias, *, tau=0.02, target_sparsity=0.5):
    num_prune = int(weight.size * target_sparsity)
    if num_prune == 0:
        thr = jnp.float32(0.0)
    else:
        thr = jnp.sort(jnp.abs(weight).reshape(-1))[num_prune - 1]
    mask = jax.nn.sigmoid((jnp.abs(weight) - thr) / tau)
    mw = weight * mask
    return x @ mw.T + bias[None, :]


if __name__ == "__main__":
    key = jax.random.PRNGKey(0)
    k_x, k_w, k_b = jax.random.split(key, 3)

    # batch, in_features, out_features -- tile-aligned; with block 128 this gives a
    # 2x2 (n, m) grid so the weight-resident / mask-hoisting path is actually exercised.
    B, K, N = 256, 128, 256

    x = jax.random.normal(k_x, (B, K), dtype=jnp.float32)
    # Deterministic nn.Linear-style init: U(-1/sqrt(K), 1/sqrt(K))
    bound = 1.0 / (K ** 0.5)
    weight = jax.random.uniform(k_w, (N, K), minval=-bound, maxval=bound, dtype=jnp.float32)
    bias = jax.random.uniform(k_b, (N,), minval=-bound, maxval=bound, dtype=jnp.float32)

    ref = _reference(x, weight, bias, tau=0.02, target_sparsity=0.5)

    # 1) Exact path (f32 operands): tight tolerance against the f32 reference.
    out_f32 = pdp_linear(x, weight, bias, tau=0.02, target_sparsity=0.5,
                         block_m=128, block_n=128,
                         compute_dtype=jnp.float32, mask_dtype=jnp.float32)
    out_f32 = jax.block_until_ready(out_f32)
    assert out_f32.shape == (B, N)
    assert jnp.allclose(out_f32, ref, atol=1e-5, rtol=1e-5), "f32 path mismatch vs reference"

    # 2) Default fast path (bf16 operands cast in the wrapper, f32 accumulation),
    #    2x2 grid so the m==0 mask hoist is reused across batch tiles.
    out_bf16 = pdp_linear(x, weight, bias, tau=0.02, target_sparsity=0.5,
                          block_m=128, block_n=128)
    out_bf16 = jax.block_until_ready(out_bf16)
    assert out_bf16.shape == (B, N)
    max_err = float(jnp.max(jnp.abs(out_bf16 - ref)))
    assert max_err <= 5e-2, f"bf16 path error too large: {max_err}"

    # 3) Large default tiles (tm=tn=256), cached threshold, bf16 mask math (v6e/v7x
    #    option) and bf16 output writeback.
    thr_cached = compute_pdp_threshold(weight, 0.5)
    out_fast = pdp_linear(x, weight, bias, tau=0.02, target_sparsity=0.5,
                          threshold=thr_cached,
                          mask_dtype=jnp.bfloat16, out_dtype=jnp.bfloat16)
    out_fast = jax.block_until_ready(out_fast)
    assert out_fast.shape == (B, N)
    max_err_fast = float(jnp.max(jnp.abs(out_fast.astype(jnp.float32) - ref)))
    assert max_err_fast <= 5e-2, f"bf16-mask/bf16-out path error too large: {max_err_fast}"

    print("KERNEL_OK")
</pallas_src>

<mosaic_0001>
module attributes {stable_mosaic.version = 11 : i64} {
  func.func @_pdp_linear_kernel(%arg0: i32, %arg1: i32, %arg2: memref<1x1xf32, #tpu.memory_space<smem>>, %arg3: memref<128x128xf32, #tpu.memory_space<vmem>>, %arg4: memref<128x128xf32, #tpu.memory_space<vmem>>, %arg5: memref<1x128xf32, #tpu.memory_space<vmem>>, %arg6: memref<128x128xf32, #tpu.memory_space<vmem>>, %arg7: memref<128x128xf32, #tpu.memory_space<vmem>>) attributes {dimension_semantics = [#tpu.dimension_semantics<parallel>, #tpu.dimension_semantics<arbitrary>], iteration_bounds = array<i64: 2, 2>, scalar_prefetch = 0 : i64, scratch_operands = 1 : i64, tpu.core_type = #tpu.core_type<tc>, window_params = [{transform_indices = @transform_0, window_bounds = array<i64: 1, 1>}, {transform_indices = @transform_1, window_bounds = array<i64: 128, 128>}, {transform_indices = @transform_2, window_bounds = array<i64: 128, 128>}, {transform_indices = @transform_3, window_bounds = array<i64: 1, 128>}, {transform_indices = @transform_4, window_bounds = array<i64: 128, 128>}]} {
    %c0_i32 = arith.constant 0 : i32
    %0 = arith.cmpi eq, %arg1, %c0_i32 : i32
    %1 = arith.extui %0 : i1 to i32
    %c0_i32_0 = arith.constant 0 : i32
    %2 = arith.cmpi ne, %1, %c0_i32_0 : i32
    scf.if %2 {
      %c0_8 = arith.constant 0 : index
      %c0_9 = arith.constant 0 : index
      %10 = vector.load %arg4[%c0_8, %c0_9] : memref<128x128xf32, #tpu.memory_space<vmem>>, vector<128x128xf32>
      %c0_10 = arith.constant 0 : index
      %c0_11 = arith.constant 0 : index
      %11 = memref.load %arg2[%c0_10, %c0_11] : memref<1x1xf32, #tpu.memory_space<smem>>
      %12 = math.absf %10 : vector<128x128xf32>
      %13 = vector.broadcast %11 : f32 to vector<128x128xf32>
      %14 = arith.subf %12, %13 : vector<128x128xf32>
      %cst_12 = arith.constant 5.000000e+01 : f32
      %15 = vector.broadcast %cst_12 : f32 to vector<128x128xf32>
      %16 = arith.mulf %14, %15 : vector<128x128xf32>
      %17 = arith.negf %16 : vector<128x128xf32>
      %18 = math.exp %17 : vector<128x128xf32>
      %cst_13 = arith.constant 1.000000e+00 : f32
      %19 = vector.broadcast %cst_13 : f32 to vector<128x128xf32>
      %20 = arith.addf %19, %18 : vector<128x128xf32>
      %21 = arith.divf %19, %20 : vector<128x128xf32>
      %22 = arith.mulf %10, %21 : vector<128x128xf32>
      %c0_14 = arith.constant 0 : index
      %c0_15 = arith.constant 0 : index
      %23 = vector.load %arg7[%c0_14, %c0_15] : memref<128x128xf32, #tpu.memory_space<vmem>>, vector<128x128xf32>
      tpu.vector_store %arg7[%c0_14, %c0_15], %22 {strides = array<i32>} : memref<128x128xf32, #tpu.memory_space<vmem>>, vector<128x128xf32>,
    } else {
    }
    %c0 = arith.constant 0 : index
    %c0_1 = arith.constant 0 : index
    %3 = vector.load %arg3[%c0, %c0_1] : memref<128x128xf32, #tpu.memory_space<vmem>>, vector<128x128xf32>
    %c0_2 = arith.constant 0 : index
    %c0_3 = arith.constant 0 : index
    %4 = vector.load %arg7[%c0_2, %c0_3] : memref<128x128xf32, #tpu.memory_space<vmem>>, vector<128x128xf32>
    %cst = arith.constant dense<0.000000e+00> : vector<128x128xf32>
    %5 = tpu.matmul %3, %4, %cst {dimension_numbers = #tpu.dot_dimension_numbers<[1], [1], [0], [0], [0, 0, 1, 0], [], []>} : vector<128x128xf32>, vector<128x128xf32>, vector<128x128xf32> -> vector<128x128xf32>
    %c0_4 = arith.constant 0 : index
    %c0_5 = arith.constant 0 : index
    %6 = vector.load %arg5[%c0_4, %c0_5] : memref<1x128xf32, #tpu.memory_space<vmem>>, vector<1x128xf32>
    %7 = vector.broadcast %6 : vector<1x128xf32> to vector<128x128xf32>
    %8 = arith.addf %5, %7 : vector<128x128xf32>
    %c0_6 = arith.constant 0 : index
    %c0_7 = arith.constant 0 : index
    %9 = vector.load %arg6[%c0_6, %c0_7] : memref<128x128xf32, #tpu.memory_space<vmem>>, vector<128x128xf32>
    tpu.vector_store %arg6[%c0_6, %c0_7], %8 {strides = array<i32>} : memref<128x128xf32, #tpu.memory_space<vmem>>, vector<128x128xf32>,
    return
  }
  func.func @transform_0(%arg0: i32, %arg1: i32) -> (i32, i32) {
    %c0_i32 = arith.constant 0 : i32
    %c0_i32_0 = arith.constant 0 : i32
    %c0_i32_1 = arith.constant 0 : i32
    return %c0_i32, %c0_i32_0 : i32, i32
  }
  func.func @transform_1(%arg0: i32, %arg1: i32) -> (i32, i32) {
    %c0_i32 = arith.constant 0 : i32
    %c0_i32_0 = arith.constant 0 : i32
    return %arg1, %c0_i32 : i32, i32
  }
  func.func @transform_2(%arg0: i32, %arg1: i32) -> (i32, i32) {
    %c0_i32 = arith.constant 0 : i32
    %c0_i32_0 = arith.constant 0 : i32
    return %arg0, %c0_i32 : i32, i32
  }
  func.func @transform_3(%arg0: i32, %arg1: i32) -> (i32, i32) {
    %c0_i32 = arith.constant 0 : i32
    %c0_i32_0 = arith.constant 0 : i32
    return %c0_i32, %arg0 : i32, i32
  }
  func.func @transform_4(%arg0: i32, %arg1: i32) -> (i32, i32) {
    %c0_i32 = arith.constant 0 : i32
    return %arg1, %arg0 : i32, i32
  }
}

</mosaic_0001>

<bundles_post_ra>
// kernel: tpu_custom_call.1
= control target key start
LH: loop header
LB: loop body
LE: loop exit
PB: predicated region body
PF: predicated region fallthrough
CT: control target
= control target key end

     0   :  { %s2181_s0 = inlined_call_operand.<no memory space> [shape: f32[1,1], index: 0, kind: input, shape index: {}]   ;;  %s2182_s1 = inlined_call_operand.hbm [shape: f32[256,128], index: 1, kind: input, shape index: {}]   ;;  %s2183_s2 = inlined_call_operand.hbm [shape: f32[256,128], index: 2, kind: input, shape index: {}]   ;;  %s2184_s3 = inlined_call_operand.vmem [shape: f32[1,256], index: 3, kind: input, shape index: {}]   ;;  %s2185_s4 = inlined_call_operand.hbm [shape: f32[256,256], index: 4, kind: output, shape index: {}]  }
   0x1   :  { %2193 = sst [smem:[#allocation19_spill]] %s2182_s1 }
   0x2   :  { %2194 = sst [smem:[#allocation20_spill]] %s2185_s4 }
   0x3   :  { %9 = sst [smem:[#allocation3]] %s2181_s0 }
   0x4   :  { %10 = vsyncpa [#allocation5], 0 }
   0x5   :  { %12 = vsyncpa [#allocation5 + $0x1], 0 }
   0x6   :  { %13 = vsyncpa [#allocation8], 0 }
   0x7   :  { %15 = vsyncpa [#allocation8 + $0x1], 0 }
   0x8   :  { %16 = vsyncpa [#allocation6], 0 }
   0x9   :  { %18 = vsyncpa [#allocation6 + $0x1], 0  ;;  %s1485_s17 = smov 0   ;;  %s1487_s18 = smov 0  }
   0xa   :  { %s1489_s19 = smov 0   ;;  %s1491_s20 = smov 0  }
   0xb   :  { %s1493_s21 = smov 0   ;;  %s1495_s22 = smov 0  }
   0xc   :  { %s1497_s23 = smov 0   ;;  %s1499_s0 = smov 0  }
   0xd   :  { %s1501_s24 = smov 0   ;;  %s1503_s25 = smov 0  }
   0xe   :  { %s1505_s26 = smov 0   ;;  %s1507_s27 = smov 0  }
   0xf   :  { %s1509_s28 = smov 0   ;;  %s1511_s29 = smov 0  }
  0x10 LB: > { %2195 = sst [smem:[#allocation13_spill]] %s1430_s24  ;;  %s951_s30 = sadd.s32 4294967295, %s1450_s29   ;;  %s1450_s29 = sphi %s1511_s29, %s24_s29   ;;  %s1446_s28 = sphi %s1509_s28, %s2279_s28   ;;  %s1442_s27 = sphi %s1507_s27, %s2267_s27   ;;  %s1438_s26 = sphi %s1505_s26, %s2278_s26   ;;  %s1434_s25 = sphi %s1503_s25, %s2266_s25   ;;  %s1430_s24 = sphi %s1501_s24, %s2265_s24   ;;  %s1426_s0 = sphi %s1499_s0, %s2277_s0   ;;  %s1422_s23 = sphi %s1497_s23, %s2276_s23   ;;  %s1418_s22 = sphi %s1495_s22, %s2275_s22   ;;  %s1414_s21 = sphi %s1493_s21, %s2274_s21   ;;  %s1410_s20 = sphi %s1491_s20, %s2273_s20   ;;  %s1406_s19 = sphi %s1489_s19, %s2272_s19   ;;  %s1402_s18 = sphi %s1487_s18, %s2271_s18   ;;  %s1398_s17 = sphi %s1485_s17, %s2270_s17  }
  0x11   : > { %2196 = sst [smem:[#allocation14_spill]] %s1434_s25  ;;  %s33_s5 = sadd.s32 1, %s1442_s27 }
  0x12   : > { %2197 = sst [smem:[#allocation15_spill]] %s1442_s27  ;;  %p1555_p0 = scmp.ge.s32.totalorder %s33_s5, 2 }
  0x13   : > { %s64_s7 = sadd.s32 1, %s1430_s24  ;;  %p71_p1 = scmp.ne.s32.totalorder %s1430_s24, %s1426_s0 }
  0x14   : > { %p72_p2 = scmp.eq.s32.totalorder %s1450_s29, 0  ;;  %s2281_s5 = smov (%p1555_p0, %s33_s5), 0 }
  0x15   : > { %2199 = sst [smem:[#allocation16_spill]] %s2281_s5  ;;  %p77_p4 = scmp.ne.s32.totalorder %s1426_s0, %s1422_s23 }
  0x16   : > { %p1569_p3 = por %p72_p2, %p71_p1  ;;  %s1576_s9 = ssub.s32 %s1442_s27, %s2281_s5 }
  0x17   : > { %p1578_p5 = scmp.eq.s32.totalorder %s951_s30, 0  ;;  %p62_p6 = scmp.eq.s32.totalorder %s1576_s9, 0 }
  0x18   : > { %p1583_p7 = scmp.eq.s32.totalorder %s951_s30, 3  ;;  %p1056_p9 = scmp.lt.s32.totalorder %s1450_s29, 4 }
  0x19   : > { %p1589_p8 = por %p1578_p5, %p77_p4  ;;  %s184_s14 = sand.u32 1, %s1430_s24  }
  0x1a   : > { %s1594_s13 = scalar_select %p62_p6, %s1430_s24, %s64_s7  }
  0x1b   : > { %s955_s15 = sshll.u32 %s184_s14, 7  ;;  %s988_s16 = sshll.u32 %s1442_s27, 7 }
  0x1c   : > { %2204 = sst [smem:[#allocation17_spill]] %s1594_s13  ;;  %s188_s4 = scalar_lea.vmem [#allocation4], %s955_s15 }
  0x1d   : > { %s2205_s1 = sld [smem:[#allocation19_spill]]  ;;  %s196_s25 = sshll.u32 %s188_s4, 4  ;;  %s197_s25 = int_to_ptr.vmem [resolvable:$true] %s196_s25 }
  0x1e   : > { %p1046_p10 = pnand %p1056_p9, %p1569_p3  ;;  %p961_p11 = scmp.ge.s32.totalorder %s1450_s29, 1 }
  0x1f   : > { %s185_s5 = scalar_lea.sflag [#allocation5], %s184_s14  ;;  %s2189_s15 = smov 8  }
  0x20   : > { %p232_p12 = scmp.lt.s32.totalorder %s1450_s29, 5  ;;  %s952_s8 = sadd.s32 4294967294, %s1450_s29  }
  0x21   : > { %s36_s14 = sadd.s32 1, %s1446_s28  ;;  %s90_s23 = sadd.s32 1, %s1418_s22 }
  0x22   : > { %p1611_p13 = pnand %p961_p11, %p232_p12  ;;  %s2283_s14 = smov (!%p1555_p0, %s36_s14), %s1446_s28 }
  0x23   : > { %s193_s30 = scalar_lea.hbm %s2205_s1, %s988_s16  ;;  %s2188_s16 = smov 128  }
  0x24   : > { %s194_s7 = sshll.u32 %s193_s30, 4  ;;  %p97_p1 = scmp.ne.s32.totalorder %s1418_s22, %s1414_s21  ;;  %s195_s7 = int_to_ptr.hbm [resolvable:$true] %s194_s7 }
  0x25   : > { %1048 = dma.hbm_to_vmem [thread:$0]  (!%p1046_p10), %s195_s7, 2048, %s197_s25, %s185_s5, %s2188_s16, %s2188_s16, %s2189_s15  }
  0x26   : > { %p38_p3 = scmp.ge.s32.totalorder %s2283_s14, 2  ;;  %p103_p4 = scmp.ne.s32.totalorder %s1414_s21, %s1410_s20 }
  0x27   : > { %p1627_p6 = por %p97_p1, %p72_p2  ;;  %s144_s30 = sadd.s32 1, %s1406_s19 }
  0x28   : > { %s2285_s14 = smov (%p38_p3, %s2283_s14), 0  ;;  %p1636_p10 = por %p103_p4, %p1578_p5 }
  0x29   : > { %2208 = sst [smem:[#allocation18_spill]] %s2285_s14  ;;  %p154_p0 = scmp.ne.s32.totalorder %s1406_s19, %s1402_s18 }
  0x2a   : > { %s87_s7 = ssub.s32 %s1446_s28, %s2285_s14  ;;  %p160_p11 = scmp.ne.s32.totalorder %s1402_s18, %s1398_s17 }
  0x2b   : > { %p88_p12 = scmp.eq.s32.totalorder %s87_s7, 0  ;;  %s141_s20 = sor.u32 %s87_s7, %s1576_s9 }
  0x2c   : > { %p142_p2 = scmp.eq.s32.totalorder %s141_s20, 0  ;;  %p1649_p1 = por %p1583_p7, %p154_p0 }
  0x2d   : > { %s1654_s16 = scalar_select %p88_p12, %s1418_s22, %s90_s23  }
  0x2e   : > { %s1657_s10 = scalar_select %p142_p2, %s1406_s19, %s144_s30  }
  0x2f   : > { %p161_p5 = scmp.eq.s32.totalorder %s952_s8, 3  ;;  %s206_s15 = sand.u32 1, %s1418_s22  }
  0x30   : > { %s958_s1 = sshll.u32 %s206_s15, 7  ;;  %s989_s27 = sshll.u32 %s1446_s28, 7 }
  0x31   : > { %p1660_p3 = por %p161_p5, %p160_p11  ;;  %s210_s13 = scalar_lea.vmem [#allocation7], %s958_s1 }
  0x32   : > { %s218_s9 = sshll.u32 %s210_s13, 4  ;;  %s215_s20 = scalar_lea.hbm %s2183_s2, %s989_s27  ;;  %s219_s9 = int_to_ptr.vmem [resolvable:$true] %s218_s9 }
  0x33   : > { %s216_s24 = sshll.u32 %s215_s20, 4  ;;  %p1049_p7 = pnand %p1056_p9, %p1627_p6  ;;  %s217_s24 = int_to_ptr.hbm [resolvable:$true] %s216_s24 }
  0x34   : > { %s207_s8 = scalar_lea.sflag [#allocation8], %s206_s15  ;;  %s2212_s23 = smov 8  }
  0x35   : > { %s2213_s30 = smov 128   ;;  %236 = sbr.rel (%p1611_p13) target bundleno = 407 (0x197), region = 36 }
  0x36   : > { %1051 = dma.hbm_to_vmem [thread:$0]  (!%p1049_p7), %s217_s24, 2048, %s219_s9, %s207_s8, %s2213_s30, %s2213_s30, %s2212_s23  }
  0x37   : > { %s238_s1 = sand.u32 (!%p1611_p13), 1, %s1426_s0  }
  0x38   : > { %s962_s13 = sshll.u32 (!%p1611_p13), %s238_s1, 7  ;;  %s239_s7 = scalar_lea.sflag (!%p1611_p13), [#allocation5], %s238_s1 }
  0x39   : > { %s1678_s27 = scalar_lea.vmem (!%p1611_p13), [#allocation4], %s962_s13 }
  0x3a   : > { %1385 = dma.done.wait (%p1589_p8), %s239_s7, 2048  }
  0x3b   : > { %1387 = vsyncadd (%p1589_p8), %s239_s7, 4294965248  ;;  %s248_s15 = sand.u32 1, %s1414_s21  }
  0x3c   : > { %s963_s25 = sshll.u32 %s248_s15, 7  ;;  %s249_s24 = scalar_lea.sflag [#allocation8], %s248_s15 }
  0x3d   : > { %s1685_s9 = scalar_lea.vmem [#allocation7], %s963_s25 }
  0x3e   : > { %1389 = dma.done.wait (%p1636_p10), %s249_s24, 2048  }
  0x3f   : > { %1391 = vsyncadd (%p1636_p10), %s249_s24, 4294965248  ;;  %s283_s4 = sand.u32 1, %s1402_s18   ;;  %p288_p9 = scmp.lt.s32.totalorder %s1438_s26, 1 }
  0x40   : > { %s964_s12 = sshll.u32 %s283_s4, 7  ;;  %s2214_s1 = sld [smem:[#allocation14_spill]] }
  0x41   : > { %s1696_s11 = scalar_select %p288_p9, %s1438_s26, 1 }
  0x42   : > { %s1702_s30 = scalar_lea.vmem [#allocation9], %s964_s12 }
  0x43   : > { %s290_s23 = scalar_lea.vmem %s2184_s3, %s1696_s11 }
  0x46   : > { %p965_p8 = scmp.ne.s32.totalorder %s2214_s1, 0 }
  0x47   : > { %s312_s6 = sld [smem:[#allocation3]] (!%p965_p8) }
  0x48   : > { %295 = sbr.rel (%p965_p8) target bundleno = 173 (0xad), region = 48 }
  0x4d   : > { %v1706_v0 = vld [vmem:[%s1685_s9] sm:$0xff]  ;;  %v1709_v1 = vld [vmem:[%s1685_s9 + $0x8] sm:$0xff]  ;;  %v1712_v2 = vld [vmem:[%s1685_s9 + $0x10] sm:$0xff]  ;;  %v1739_v16 = vstv %s312_s6 }
  0x4e   : > { %v313_v3 = vand.u32 2147483647, %v1706_v0  ;;  %v1716_v4 = vld [vmem:[%s1685_s9 + $0x18] sm:$0xff]  ;;  %v1719_v5 = vld [vmem:[%s1685_s9 + $0x20] sm:$0xff]  ;;  %v1722_v6 = vld [vmem:[%s1685_s9 + $0x28] sm:$0xff] }
  0x4f   : > { %v314_v7 = vand.u32 2147483647, %v1709_v1  ;;  %v315_v8 = vand.u32 2147483647, %v1712_v2  ;;  %v316_v9 = vand.u32 2147483647, %v1716_v4 }
  0x50   : > { %v317_v10 = vand.u32 2147483647, %v1719_v5  ;;  %v318_v11 = vand.u32 2147483647, %v1722_v6  ;;  %v1730_v12 = vld [vmem:[%s1685_s9 + $0x30] sm:$0xff]  ;;  %v1733_v13 = vld [vmem:[%s1685_s9 + $0x38] sm:$0xff]  ;;  %v330_v18 = vsub.f32 %v313_v3, %v1739_v16 }
  0x51   : > { %v319_v14 = vand.u32 2147483647, %v1730_v12  ;;  %v1737_v15 = vld [vmem:[%s1685_s9 + $0x40] sm:$0xff]  ;;  %v320_v17 = vand.u32 2147483647, %v1733_v13  ;;  %v331_v19 = vsub.f32 %v314_v7, %v1739_v16  ;;  %v332_v20 = vsub.f32 %v315_v8, %v1739_v16  ;;  %v1751_v32 = vld [vmem:[%s1685_s9 + $0x48] sm:$0xff] }
  0x52   : > { %v333_v21 = vsub.f32 %v316_v9, %v1739_v16  ;;  %v334_v22 = vsub.f32 %v317_v10, %v1739_v16  ;;  %v335_v23 = vsub.f32 %v318_v11, %v1739_v16  ;;  %v321_v25 = vand.u32 2147483647, %v1737_v15  ;;  %v1754_v33 = vld [vmem:[%s1685_s9 + $0x50] sm:$0xff]  ;;  %v1757_v34 = vld [vmem:[%s1685_s9 + $0x58] sm:$0xff]  ;;  %v1765_v48 = vld [vmem:[%s1685_s9 + $0x60] sm:$0xff] }
  0x53   : > { %v336_v24 = vsub.f32 %v319_v14, %v1739_v16  ;;  %v966_v26 = vmul.f32 -50.0, %v330_v18  ;;  %v967_v27 = vmul.f32 -50.0, %v331_v19  ;;  %v968_v28 = vmul.f32 -50.0, %v332_v20  ;;  %v1783_v8 = vld [vmem:[%s1685_s9 + $0x68] sm:$0xff] }
  0x54   : > { %v969_v29 = vmul.f32 -50.0, %v333_v21  ;;  %v970_v30 = vmul.f32 -50.0, %v334_v22  ;;  %v971_v31 = vmul.f32 -50.0, %v335_v23  ;;  %v337_v40 = vsub.f32 %v320_v17, %v1739_v16 }
  0x55   : > { %v378_v35 = vmul.f32 1.442695, %v966_v26  ;;  %v380_v36 = vmul.f32 1.442695, %v967_v27  ;;  %v382_v37 = vmul.f32 1.442695, %v968_v28  ;;  %v338_v43 = vsub.f32 %v321_v25, %v1739_v16 }
  0x56   : > { %v384_v38 = vmul.f32 1.442695, %v969_v29  ;;  %v972_v39 = vmul.f32 -50.0, %v336_v24  ;;  %v386_v41 = vmul.f32 1.442695, %v970_v30  ;;  %v973_v47 = vmul.f32 -50.0, %v337_v40 }
  0x57   : > { %1175 = vpow2.f32 %v378_v35  ;;  %v388_v42 = vmul.f32 1.442695, %v971_v31  ;;  %v322_v44 = vand.u32 2147483647, %v1751_v32  ;;  %v323_v45 = vand.u32 2147483647, %v1754_v33 }
  0x58   : > { %1177 = vpow2.f32 %v380_v36  ;;  %v324_v46 = vand.u32 2147483647, %v1757_v34  ;;  %v390_v49 = vmul.f32 1.442695, %v972_v39  ;;  %v974_v50 = vmul.f32 -50.0, %v338_v43 }
  0x59   : > { %1179 = vpow2.f32 %v382_v37  ;;  %v339_v51 = vsub.f32 %v322_v44, %v1739_v16  ;;  %v340_v52 = vsub.f32 %v323_v45, %v1739_v16  ;;  %v325_v55 = vand.u32 2147483647, %v1765_v48 }
  0x5a   : > { %1181 = vpow2.f32 %v384_v38  ;;  %v341_v53 = vsub.f32 %v324_v46, %v1739_v16  ;;  %v392_v58 = vmul.f32 1.442695, %v973_v47  ;;  %v394_v61 = vmul.f32 1.442695, %v974_v50 }
  0x5b   : > { %1183 = vpow2.f32 %v386_v41  ;;  %v1776_v63 = vmul.f32 -50.0, %v339_v51  ;;  %v1778_v3 = vmul.f32 -50.0, %v340_v52  ;;  %v1789_v14 = vsub.f32 %v325_v55, %v1739_v16 }
  0x5c   : > { %1185 = vpow2.f32 %v388_v42  ;;  %v1780_v7 = vmul.f32 -50.0, %v341_v53  ;;  %v326_v23 = vand.u32 2147483647, %v1783_v8 }
  0x5d   : > { %v1176_v54 = vpop.eup %1175  ;;  %1187 = vpow2.f32 %v390_v49 }
  0x5e   : > { %v1178_v56 = vpop.eup %1177  ;;  %v1771_v57 = vadd.f32 1.0, %v1176_v54 }
  0x5f   : > { %v1180_v59 = vpop.eup %1179  ;;  %v1773_v60 = vadd.f32 1.0, %v1178_v56  ;;  %v978_v56 = vmul.f32 -50.0, %v1789_v14 }
  0x60   : > { %v1182_v62 = vpop.eup %1181  ;;  %1189 = vrcp.f32 %v1771_v57  ;;  %v435_v10 = vand.u32 2147483647, %v1771_v57  ;;  %v437_v11 = vand.u32 2147483648, %v1771_v57  ;;  %v1792_v19 = vadd.f32 1.0, %v1180_v59 }
  0x61   : > { %v1184_v9 = vpop.eup %1183  ;;  %1191 = vrcp.f32 %v1773_v60  ;;  %v450_v18 = vand.u32 2147483647, %v1773_v60  ;;  %v1794_v20 = vadd.f32 1.0, %v1182_v62  ;;  %v452_v21 = vand.u32 2147483648, %v1773_v60 }
  0x62   : > { %v1186_v17 = vpop.eup %1185  ;;  %1193 = vpow2.f32 %v392_v58  ;;  %v1797_v22 = vadd.f32 1.0, %v1184_v9  ;;  %vm431_vm0 = vweird.f32 %v1771_v57  ;;  %vm446_vm1 = vweird.f32 %v1773_v60 }
  0x63   : > { %1195 = vpow2.f32 %v394_v61  ;;  %v467_v24 = vand.u32 2147483648, %v1792_v19  ;;  %v1188_v25 = vpop.eup %1187  ;;  %vm1804_vm2 = vcmp.eq.f32.partialorder %v435_v10, 8.507059e+37  ;;  %v438_v27 = vor.u32 1.1754944e-38, %v437_v11 }
  0x64   : > { %1197 = vrcp.f32 %v1792_v19  ;;  %v465_v28 = vand.u32 2147483647, %v1792_v19  ;;  %v1810_v29 = vadd.f32 1.0, %v1186_v17  ;;  %vm1812_vm3 = vcmp.eq.f32.partialorder %v450_v18, 8.507059e+37 }
  0x65   : > { %1199 = vrcp.f32 %v1794_v20  ;;  %v480_v35 = vand.u32 2147483647, %v1794_v20  ;;  %v482_v36 = vand.u32 2147483648, %v1794_v20  ;;  %v453_v39 = vor.u32 1.1754944e-38, %v452_v21 }
  0x66   : > { %v1190_v30 = vpop.eup %1189  ;;  %1201 = vrcp.f32 %v1797_v22  ;;  %vm461_vm4 = vweird.f32 %v1792_v19  ;;  %vm476_vm5 = vweird.f32 %v1794_v20  ;;  %v468_v42 = vor.u32 1.1754944e-38, %v467_v24 }
  0x67   : > { %v1192_v37 = vpop.eup %1191  ;;  %v427_v38 = vmul.f32 %v1190_v30, %v1771_v57  ;;  %v495_v43 = vand.u32 2147483647, %v1797_v22  ;;  %v497_v44 = vand.u32 2147483648, %v1797_v22  ;;  %vm432_vm6 = vweird.f32 %v1190_v30 }
  0x68   : > { %v1194_v40 = vpop.eup %1193  ;;  %v442_v41 = vmul.f32 %v1192_v37, %v1773_v60  ;;  %vm1825_vm7 = vcmp.eq.f32.partialorder %v465_v28, 8.507059e+37  ;;  %vm491_vm8 = vweird.f32 %v1797_v22  ;;  %1203 = vrcp.f32 %v1810_v29  ;;  %vm1845_vm13 = vmor %vm431_vm0, %vm432_vm6 }
  0x69   : > { %v1196_v45 = vpop.eup %1195  ;;  %v428_v46 = vsub.f32 1.0, %v427_v38  ;;  %vm447_vm9 = vweird.f32 %v1192_v37  ;;  %vm1831_vm10 = vcmp.eq.f32.partialorder %v480_v35, 8.507059e+37  ;;  %v483_v52 = vor.u32 1.1754944e-38, %v482_v36 }
  0x6a   : > { %v1198_v49 = vpop.eup %1197  ;;  %v443_v50 = vsub.f32 1.0, %v442_v41  ;;  %vm506_vm11 = vweird.f32 %v1810_v29  ;;  %vm1837_vm12 = vcmp.eq.f32.partialorder %v495_v43, 8.507059e+37  ;;  %v510_v58 = vand.u32 2147483647, %v1810_v29  ;;  %vm1854_vm14 = vmor %vm446_vm1, %vm447_vm9 }
  0x6b   : > { %v1200_v53 = vpop.eup %1199  ;;  %v429_v54 = vmul.f32 %v1190_v30, %v428_v46  ;;  %v457_v55 = vmul.f32 %v1198_v49, %v1792_v19  ;;  %v498_v10 = vor.u32 1.1754944e-38, %v497_v44  ;;  %v512_v11 = vand.u32 2147483648, %v1810_v29 }
  0x6c   : > { %v1202_v59 = vpop.eup %1201  ;;  %v444_v62 = vmul.f32 %v1192_v37, %v443_v50  ;;  %v472_v9 = vmul.f32 %v1200_v53, %v1794_v20  ;;  %vm462_vm15 = vweird.f32 %v1198_v49  ;;  %vm477_vm0 = vweird.f32 %v1200_v53 }
  0x6d   : > { %v430_v17 = vadd.f32 %v1190_v30, %v429_v54  ;;  %v458_v21 = vsub.f32 1.0, %v457_v55  ;;  %v487_v57 = vmul.f32 %v1202_v59, %v1797_v22  ;;  %vm492_vm6 = vweird.f32 %v1202_v59  ;;  %vm1869_vm1 = vmor %vm461_vm4, %vm462_vm15 }
  0x6e   : > { %v445_v24 = vadd.f32 %v1192_v37, %v444_v62  ;;  %v473_v28 = vsub.f32 1.0, %v472_v9  ;;  %v1204_v35 = vpop.eup %1203  ;;  %v1861_v43 = vadd.f32 1.0, %v1188_v25  ;;  %vm1888_vm4 = vmor %vm491_vm8, %vm492_vm6  ;;  %v1895_v61 = vadd.f32 1.0, %v1194_v40 }
  0x6f   : > { %v434_v36 = vsel %vm1845_vm13, %v1190_v30, %v430_v17  ;;  %v459_v38 = vmul.f32 %v1198_v49, %v458_v21  ;;  %v488_v41 = vsub.f32 1.0, %v487_v57  ;;  %v502_v54 = vmul.f32 %v1204_v35, %v1810_v29 }
  0x70   : > { %v439_v60 = vsel %vm1804_vm2, %v438_v27, %v434_v36  ;;  %v449_v44 = vsel %vm1854_vm14, %v1192_v37, %v445_v24  ;;  %v474_v50 = vmul.f32 %v1200_v53, %v473_v28  ;;  %vm1880_vm2 = vmor %vm476_vm5, %vm477_vm0  ;;  %1205 = vrcp.f32 %v1861_v43 }
  0x71   : > { %v666_v30 = vmul.f32 %v439_v60, %v1706_v0  ;;  %v454_v25 = vsel %vm1812_vm3, %v453_v39, %v449_v44  ;;  %v460_v55 = vadd.f32 %v1198_v49, %v459_v38  ;;  %v489_v19 = vmul.f32 %v1202_v59, %v488_v41 }
  0x72   : > { %v667_v27 = vmul.f32 %v454_v25, %v1709_v1  ;;  %v475_v37 = vadd.f32 %v1200_v53, %v474_v50  ;;  %v503_v31 = vsub.f32 1.0, %v502_v54  ;;  %vm507_vm3 = vweird.f32 %v1204_v35  ;;  %v1961_v25 = vld [vmem:[%s1685_s9 + $0x78] sm:$0xff] }
  0x73   : > { %682 = vst [vmem:[#allocation2 + $0x30] sm:$0xff] %v666_v30  ;;  %v464_v20 = vsel %vm1869_vm1, %v1198_v49, %v460_v55  ;;  %v490_v39 = vadd.f32 %v1202_v59, %v489_v19  ;;  %v1901_v9 = vadd.f32 1.0, %v1196_v45  ;;  %vm1910_vm5 = vmor %vm506_vm11, %vm507_vm3  ;;  %v525_v51 = vand.u32 2147483647, %v1861_v43 }
  0x74   : > { %683 = vst [vmem:[#allocation2] sm:$0xff] %v667_v27  ;;  %v469_v1 = vsel %vm1825_vm7, %v468_v42, %v464_v20  ;;  %v479_v22 = vsel %vm1880_vm2, %v1200_v53, %v475_v37  ;;  %v504_v62 = vmul.f32 %v1204_v35, %v503_v31  ;;  %v513_v42 = vor.u32 1.1754944e-38, %v512_v11 }
  0x75   : > { %v668_v17 = vmul.f32 %v469_v1, %v1712_v2  ;;  %v484_v49 = vsel %vm1831_vm10, %v483_v52, %v479_v22  ;;  %v494_v18 = vsel %vm1888_vm4, %v1202_v59, %v490_v39  ;;  %vm511_vm7 = vcmp.eq.f32.partialorder %v510_v58, 8.507059e+37 }
  0x76   : > { %v669_v47 = vmul.f32 %v484_v49, %v1716_v4  ;;  %v499_v45 = vsel %vm1837_vm12, %v498_v10, %v494_v18  ;;  %v505_v53 = vadd.f32 %v1204_v35, %v504_v62  ;;  %1207 = vrcp.f32 %v1895_v61  ;;  %v1206_v58 = vpop.eup %1205 }
  0x77   : > { %684 = vst [vmem:[#allocation2 + $0x58] sm:$0xff] %v668_v17  ;;  %v670_v2 = vmul.f32 %v499_v45, %v1719_v5  ;;  %v396_v29 = vmul.f32 1.442695, %v1776_v63  ;;  %1209 = vrcp.f32 %v1901_v9  ;;  %v398_v4 = vmul.f32 1.442695, %v1778_v3 }
  0x78   : > { %685 = vst [vmem:[#allocation2 + $0x18] sm:$0xff] %v669_v47  ;;  %v509_v52 = vsel %vm1910_vm5, %v1204_v35, %v505_v53  ;;  %v527_v5 = vand.u32 2147483648, %v1861_v43  ;;  %v400_v10 = vmul.f32 1.442695, %v1780_v7  ;;  %v517_v63 = vmul.f32 %v1206_v58, %v1861_v43 }
  0x79   : > { %686 = vst [vmem:[#allocation2 + $0x50] sm:$0xff] %v670_v2  ;;  %v514_v59 = vsel %vm511_vm7, %v513_v42, %v509_v52  ;;  %vm521_vm8 = vweird.f32 %v1861_v43  ;;  %v540_v21 = vand.u32 2147483647, %v1895_v61  ;;  %vm522_vm9 = vweird.f32 %v1206_v58 }
  0x7a   : > { %v671_v11 = vmul.f32 %v514_v59, %v1722_v6  ;;  %vm1932_vm10 = vcmp.eq.f32.partialorder %v525_v51, 8.507059e+37  ;;  %v542_v14 = vand.u32 2147483648, %v1895_v61  ;;  %1211 = vpow2.f32 %v396_v29  ;;  %vm1955_vm14 = vmor %vm521_vm8, %vm522_vm9 }
  0x7b   : > { %v518_v57 = vsub.f32 1.0, %v517_v63  ;;  %1213 = vpow2.f32 %v398_v4  ;;  %v402_v7 = vmul.f32 1.442695, %v978_v56  ;;  %v343_v6 = vsub.f32 %v326_v23, %v1739_v16  ;;  %v1950_v23 = vld [vmem:[%s1685_s9 + $0x70] sm:$0xff] }
  0x7c   : > { %687 = vst [vmem:[#allocation2 + $0x68] sm:$0xff] %v671_v11  ;;  %v1208_v24 = vpop.eup %1207  ;;  %v528_v28 = vor.u32 1.1754944e-38, %v527_v5  ;;  %vm536_vm11 = vweird.f32 %v1895_v61  ;;  %vm551_vm12 = vweird.f32 %v1901_v9  ;;  %v555_v35 = vand.u32 2147483647, %v1901_v9 }
  0x7d   : > { %v1210_v36 = vpop.eup %1209  ;;  %v519_v38 = vmul.f32 %v1206_v58, %v518_v57  ;;  %v532_v41 = vmul.f32 %v1208_v24, %v1895_v61  ;;  %vm1944_vm13 = vcmp.eq.f32.partialorder %v540_v21, 8.507059e+37  ;;  %v557_v44 = vand.u32 2147483648, %v1901_v9 }
  0x7e   : > { %v543_v50 = vor.u32 1.1754944e-38, %v542_v14  ;;  %v547_v54 = vmul.f32 %v1210_v36, %v1901_v9  ;;  %1215 = vpow2.f32 %v400_v10  ;;  %v979_v30 = vmul.f32 -50.0, %v343_v6 }
  0x7f   : > { %v520_v55 = vadd.f32 %v1206_v58, %v519_v38  ;;  %v533_v26 = vsub.f32 1.0, %v532_v41  ;;  %vm537_vm15 = vweird.f32 %v1208_v24  ;;  %1217 = vpow2.f32 %v402_v7 }
  0x80   : > { %v1212_v19 = vpop.eup %1211  ;;  %v548_v27 = vsub.f32 1.0, %v547_v54  ;;  %vm552_vm0 = vweird.f32 %v1210_v36  ;;  %v404_v37 = vmul.f32 1.442695, %v979_v30  ;;  %v327_v43 = vand.u32 2147483647, %v1950_v23  ;;  %vm1971_vm6 = vmor %vm536_vm11, %vm537_vm15 }
  0x81   : > { %v1214_v0 = vpop.eup %1213  ;;  %v524_v31 = vsel %vm1955_vm14, %v1206_v58, %v520_v55  ;;  %v534_v20 = vmul.f32 %v1208_v24, %v533_v26  ;;  %v419_v39 = vadd.f32 1.0, %v1212_v19  ;;  %v328_v1 = vand.u32 2147483647, %v1961_v25  ;;  %vm1979_vm1 = vmor %vm551_vm12, %vm552_vm0 }
  0x82   : > { %v529_v22 = vsel %vm1932_vm10, %v528_v28, %v524_v31  ;;  %v549_v17 = vmul.f32 %v1210_v36, %v548_v27  ;;  %v420_v49 = vadd.f32 1.0, %v1214_v0  ;;  %1219 = vpow2.f32 %v404_v37 }
  0x83   : > { %v672_v18 = vmul.f32 %v529_v22, %v1730_v12  ;;  %v535_v40 = vadd.f32 %v1208_v24, %v534_v20  ;;  %v558_v47 = vor.u32 1.1754944e-38, %v557_v44  ;;  %1221 = vrcp.f32 %v419_v39 }
  0x84   : > { %v1216_v61 = vpop.eup %1215  ;;  %v550_v45 = vadd.f32 %v1210_v36, %v549_v17  ;;  %vm556_vm2 = vcmp.eq.f32.partialorder %v555_v35, 8.507059e+37  ;;  %1223 = vrcp.f32 %v420_v49  ;;  %v344_v53 = vsub.f32 %v327_v43, %v1739_v16 }
  0x85   : > { %v1218_v2 = vpop.eup %1217  ;;  %688 = vst [vmem:[#allocation2 + $0x8] sm:$0xff] %v672_v18  ;;  %v539_v12 = vsel %vm1971_vm6, %v1208_v24, %v535_v40  ;;  %v345_v51 = vsub.f32 %v328_v1, %v1739_v16  ;;  %v1993_v59 = vadd.f32 1.0, %v1216_v61  ;;  %vm566_vm4 = vweird.f32 %v419_v39 }
  0x86   : > { %v544_v9 = vsel %vm1944_vm13, %v543_v50, %v539_v12  ;;  %v554_v29 = vsel %vm1979_vm1, %v1210_v36, %v550_v45  ;;  %v1995_v5 = vadd.f32 1.0, %v1218_v2  ;;  %v980_v10 = vmul.f32 -50.0, %v344_v53 }
  0x87   : > { %v673_v52 = vmul.f32 %v544_v9, %v1733_v13  ;;  %v559_v4 = vsel %vm556_vm2, %v558_v47, %v554_v29  ;;  %v570_v16 = vand.u32 2147483647, %v419_v39  ;;  %v981_v63 = vmul.f32 -50.0, %v345_v51 }
  0x88   : > { %v1220_v56 = vpop.eup %1219  ;;  %v674_v58 = vmul.f32 %v559_v4, %v1737_v15  ;;  %v572_v14 = vand.u32 2147483648, %v419_v39  ;;  %1225 = vrcp.f32 %v1993_v59  ;;  %vm581_vm3 = vweird.f32 %v420_v49 }
  0x89   : > { %v1222_v11 = vpop.eup %1221  ;;  %689 = vst [vmem:[#allocation2 + $0x48] sm:$0xff] %v673_v52  ;;  %v1998_v13 = vadd.f32 1.0, %v1220_v56  ;;  %v585_v15 = vand.u32 2147483647, %v420_v49  ;;  %v587_v7 = vand.u32 2147483648, %v420_v49  ;;  %1227 = vrcp.f32 %v1995_v5 }
  0x8a   : > { %v1224_v21 = vpop.eup %1223  ;;  %690 = vst [vmem:[#allocation2 + $0x40] sm:$0xff] %v674_v58  ;;  %v562_v3 = vmul.f32 %v1222_v11, %v419_v39  ;;  %vm567_vm5 = vweird.f32 %v1222_v11  ;;  %v406_v24 = vmul.f32 1.442695, %v980_v10  ;;  %vm2001_vm7 = vcmp.eq.f32.partialorder %v570_v16, 8.507059e+37 }
  0x8b   : > { %v577_v57 = vmul.f32 %v1224_v21, %v420_v49  ;;  %vm582_vm8 = vweird.f32 %v1224_v21  ;;  %v600_v36 = vand.u32 2147483647, %v1993_v59  ;;  %v602_v41 = vand.u32 2147483648, %v1993_v59  ;;  %vm2009_vm9 = vmor %vm566_vm4, %vm567_vm5 }
  0x8c   : > { %v563_v6 = vsub.f32 1.0, %v562_v3  ;;  %1229 = vrcp.f32 %v1998_v13  ;;  %v408_v60 = vmul.f32 1.442695, %v981_v63  ;;  %v573_v46 = vor.u32 1.1754944e-38, %v572_v14  ;;  %vm2018_vm11 = vmor %vm581_vm3, %vm582_vm8 }
  0x8d   : > { %v578_v35 = vsub.f32 1.0, %v577_v57  ;;  %vm2013_vm10 = vcmp.eq.f32.partialorder %v585_v15, 8.507059e+37  ;;  %v588_v30 = vor.u32 1.1754944e-38, %v587_v7  ;;  %vm596_vm12 = vweird.f32 %v1993_v59 }
  0x8e   : > { %v564_v38 = vmul.f32 %v1222_v11, %v563_v6  ;;  %v1226_v55 = vpop.eup %1225  ;;  %vm611_vm13 = vweird.f32 %v1995_v5  ;;  %1231 = vpow2.f32 %v406_v24  ;;  %vm2025_vm14 = vcmp.eq.f32.partialorder %v600_v36, 8.507059e+37 }
  0x8f   : > { %v579_v50 = vmul.f32 %v1224_v21, %v578_v35  ;;  %v592_v37 = vmul.f32 %v1226_v55, %v1993_v59  ;;  %v615_v0 = vand.u32 2147483647, %v1995_v5  ;;  %v1228_v31 = vpop.eup %1227  ;;  %vm597_vm15 = vweird.f32 %v1226_v55 }
  0x90   : > { %v565_v26 = vadd.f32 %v1222_v11, %v564_v38  ;;  %v603_v39 = vor.u32 1.1754944e-38, %v602_v41  ;;  %1233 = vpow2.f32 %v408_v60  ;;  %v607_v17 = vmul.f32 %v1228_v31, %v1995_v5  ;;  %vm2046_vm6 = vmor %vm596_vm12, %vm597_vm15 }
  0x91   : > { %v580_v27 = vadd.f32 %v1224_v21, %v579_v50  ;;  %v593_v62 = vsub.f32 1.0, %v592_v37  ;;  %vm612_vm0 = vweird.f32 %v1228_v31  ;;  %v617_v42 = vand.u32 2147483648, %v1995_v5 }
  0x92   : > { %v569_v20 = vsel %vm2009_vm9, %v1222_v11, %v565_v26  ;;  %v1230_v49 = vpop.eup %1229  ;;  %v608_v45 = vsub.f32 1.0, %v607_v17  ;;  %vm626_vm1 = vweird.f32 %v1998_v13  ;;  %vm2056_vm4 = vmor %vm611_vm13, %vm612_vm0  ;;  %vm616_vm3 = vcmp.eq.f32.partialorder %v615_v0, 8.507059e+37 }
  0x93   : > { %v574_v1 = vsel %vm2001_vm7, %v573_v46, %v569_v20  ;;  %v584_v22 = vsel %vm2018_vm11, %v1224_v21, %v580_v27  ;;  %v594_v61 = vmul.f32 %v1226_v55, %v593_v62  ;;  %v622_v53 = vmul.f32 %v1230_v49, %v1998_v13 }
  0x94   : > { %v675_v18 = vmul.f32 %v574_v1, %v1751_v32  ;;  %v589_v40 = vsel %vm2013_vm10, %v588_v30, %v584_v22  ;;  %v1232_v2 = vpop.eup %1231  ;;  %vm627_vm2 = vweird.f32 %v1230_v49  ;;  %v630_v32 = vand.u32 2147483647, %v1998_v13 }
  0x95   : > { %v676_v47 = vmul.f32 %v589_v40, %v1754_v33  ;;  %v632_v33 = vand.u32 2147483648, %v1998_v13  ;;  %v595_v51 = vadd.f32 %v1226_v55, %v594_v61  ;;  %v609_v9 = vmul.f32 %v1228_v31, %v608_v45  ;;  %vm628_vm5 = vmor %vm626_vm1, %vm627_vm2 }
  0x96   : > { %691 = vst [vmem:[#allocation2 + $0x20] sm:$0xff] %v675_v18  ;;  %v623_v29 = vsub.f32 1.0, %v622_v53  ;;  %v424_v52 = vadd.f32 1.0, %v1232_v2  ;;  %v1234_v4 = vpop.eup %1233  ;;  %v618_v58 = vor.u32 1.1754944e-38, %v617_v42  ;;  %vm631_vm7 = vcmp.eq.f32.partialorder %v630_v32, 8.507059e+37 }
  0x97   : > { %692 = vst [vmem:[#allocation2 + $0x10] sm:$0xff] %v676_v47  ;;  %v599_v59 = vsel %vm2046_vm6, %v1226_v55, %v595_v51  ;;  %v610_v10 = vadd.f32 %v1228_v31, %v609_v9  ;;  %v633_v5 = vor.u32 1.1754944e-38, %v632_v33  ;;  %v425_v14 = vadd.f32 1.0, %v1234_v4 }
  0x98   : > { %v624_v11 = vmul.f32 %v1230_v49, %v623_v29  ;;  %1235 = vrcp.f32 %v424_v52  ;;  %v604_v16 = vsel %vm2025_vm14, %v603_v39, %v599_v59  ;;  %v645_v35 = vand.u32 2147483647, %v424_v52 }
  0x99   : > { %v677_v63 = vmul.f32 %v604_v16, %v1757_v34  ;;  %v614_v21 = vsel %vm2056_vm4, %v1228_v31, %v610_v10  ;;  %1237 = vrcp.f32 %v425_v14  ;;  %v647_v34 = vand.u32 2147483648, %v424_v52 }
  0x9a   : > { %v625_v3 = vadd.f32 %v1230_v49, %v624_v11  ;;  %v619_v57 = vsel %vm616_vm3, %v618_v58, %v614_v21  ;;  %vm641_vm8 = vweird.f32 %v424_v52  ;;  %vm646_vm11 = vcmp.eq.f32.partialorder %v645_v35, 8.507059e+37 }
  0x9b   : > { %693 = vst [vmem:[#allocation2 + $0x38] sm:$0xff] %v677_v63  ;;  %v678_v15 = vmul.f32 %v619_v57, %v1765_v48  ;;  %v648_v48 = vor.u32 1.1754944e-38, %v647_v34  ;;  %vm656_vm12 = vweird.f32 %v425_v14  ;;  %v662_v44 = vand.u32 2147483648, %v425_v14 }
  0x9c   : > { %v629_v7 = vsel %vm628_vm5, %v1230_v49, %v625_v3  ;;  %v660_v54 = vand.u32 2147483647, %v425_v14 }
  0x9d   : > { %v634_v6 = vsel %vm631_vm7, %v633_v5, %v629_v7  ;;  %694 = vst [vmem:[#allocation2 + $0x60] sm:$0xff] %v678_v15  ;;  %v663_v26 = vor.u32 1.1754944e-38, %v662_v44 }
  0x9e   : > { %v1236_v24 = vpop.eup %1235  ;;  %v679_v13 = vmul.f32 %v634_v6, %v1783_v8  ;;  %vm661_vm15 = vcmp.eq.f32.partialorder %v660_v54, 8.507059e+37 }
  0x9f   : > { %v637_v28 = vmul.f32 %v1236_v24, %v424_v52  ;;  %vm642_vm9 = vweird.f32 %v1236_v24  ;;  %v1238_v38 = vpop.eup %1237 }
  0xa0   : > { %695 = vst [vmem:[#allocation2 + $0x70] sm:$0xff] %v679_v13  ;;  %v652_v60 = vmul.f32 %v1238_v38, %v425_v14  ;;  %vm643_vm10 = vmor %vm641_vm8, %vm642_vm9  ;;  %vm657_vm13 = vweird.f32 %v1238_v38 }
  0xa1   : > { %v638_v36 = vsub.f32 1.0, %v637_v28  ;;  %vm658_vm14 = vmor %vm656_vm12, %vm657_vm13 }
  0xa2   : > { %v653_v50 = vsub.f32 1.0, %v652_v60 }
  0xa3   : > { %v639_v41 = vmul.f32 %v1236_v24, %v638_v36 }
  0xa4   : > { %v654_v30 = vmul.f32 %v1238_v38, %v653_v50 }
  0xa5   : > { %v640_v46 = vadd.f32 %v1236_v24, %v639_v41 }
  0xa6   : > { %v655_v27 = vadd.f32 %v1238_v38, %v654_v30 }
  0xa7   : > { %v644_v8 = vsel %vm643_vm10, %v1236_v24, %v640_v46 }
  0xa8   : > { %v649_v55 = vsel %vm646_vm11, %v648_v48, %v644_v8  ;;  %v659_v37 = vsel %vm658_vm14, %v1238_v38, %v655_v27 }
  0xa9   : > { %v680_v19 = vmul.f32 %v649_v55, %v1950_v23  ;;  %v664_v43 = vsel %vm661_vm15, %v663_v26, %v659_v37 }
  0xaa   : > { %v681_v0 = vmul.f32 %v664_v43, %v1961_v25 }
  0xab   : > { %696 = vst [vmem:[#allocation2 + $0x78] sm:$0xff] %v680_v19 }
  0xac   : > { %697 = vst [vmem:[#allocation2 + $0x28] sm:$0xff] %v681_v0 }
  0xad PF: > { %v727_v39 = vld [vmem:[#allocation2 + $0x70] sm:$0xff]  ;;  %v726_v23 = vld [vmem:[#allocation2 + $0x60] sm:$0xff]  ;;  %v725_v25 = vld [vmem:[#allocation2 + $0x38] sm:$0xff]  ;;  %s2262_s11 = sld [smem:[#allocation20_spill]] }
  0xae   : > { %v724_v1 = vld [vmem:[#allocation2 + $0x10] sm:$0xff]  ;;  %v723_v22 = vld [vmem:[#allocation2 + $0x20] sm:$0xff]  ;;  %v721_v17 = vld [vmem:[#allocation2 + $0x48] sm:$0xff] }
  0xaf   : > { %v722_v62 = vld [vmem:[#allocation2 + $0x40] sm:$0xff]  ;;  %v720_v49 = vld [vmem:[#allocation2 + $0x8] sm:$0xff]  ;;  %v718_v40 = vld [vmem:[#allocation2 + $0x50] sm:$0xff] }
  0xb0   : > { %v719_v18 = vld [vmem:[#allocation2 + $0x68] sm:$0xff]  ;;  %v717_v42 = vld [vmem:[#allocation2 + $0x18] sm:$0xff]  ;;  %v715_v61 = vld [vmem:[#allocation2] sm:$0xff] }
  0xb1   : > { %v716_v47 = vld [vmem:[#allocation2 + $0x58] sm:$0xff]  ;;  %v714_v45 = vld [vmem:[#allocation2 + $0x30] sm:$0xff]  ;;  %v706_v53 = vld [vmem:[%s1678_s27 + $0x40] sm:$0xff] }
  0xb2   : > { %v728_v20 = vld [vmem:[#allocation2 + $0x78] sm:$0xff]  ;;  %v710_v2 = vld [vmem:[%s1678_s27 + $0x60] sm:$0xff]  ;;  %v707_v33 = vld [vmem:[%s1678_s27 + $0x48] sm:$0xff] }
  0xb3   : > { %v729_v31 = vld [vmem:[#allocation2 + $0x28] sm:$0xff]  ;;  %v698_v12 = vld [vmem:[%s1678_s27] sm:$0xff]  ;;  %v708_v52 = vld [vmem:[%s1678_s27 + $0x50] sm:$0xff] }
  0xb4   : > { %992 = vmatpush.xpose.msra.mxu2 %v729_v31  ;;  %993 = vmatpush.xpose.msra.mxu3 %v729_v31  ;;  %v702_v32 = vld [vmem:[%s1678_s27 + $0x20] sm:$0xff]  ;;  %v711_v51 = vld [vmem:[%s1678_s27 + $0x68] sm:$0xff]  ;;  %v712_v4 = vld [vmem:[%s1678_s27 + $0x70] sm:$0xff] }
  0xb5   : > { %734 = vmatpush.xpose.msra.mxu0 %v729_v31  ;;  %991 = vmatpush.xpose.msra.mxu1 %v729_v31  ;;  %v699_v9 = vld [vmem:[%s1678_s27 + $0x8] sm:$0xff]  ;;  %v700_v56 = vld [vmem:[%s1678_s27 + $0x10] sm:$0xff]  ;;  %v709_v59 = vld [vmem:[%s1678_s27 + $0x58] sm:$0xff] }
  0xb6   : > { %v703_v29 = vld [vmem:[%s1678_s27 + $0x28] sm:$0xff]  ;;  %v704_v58 = vld [vmem:[%s1678_s27 + $0x30] sm:$0xff]  ;;  %v713_v10 = vld [vmem:[%s1678_s27 + $0x78] sm:$0xff] }
  0xb7   : > { %v701_v11 = vld [vmem:[%s1678_s27 + $0x18] sm:$0xff]  ;;  %v1239_v5 = vld [vmem:[%s290_s23] ss:$0 sm:$0xff]  ;;  %s816_s23 = scalar_lea.sflag [#allocation6], %s283_s4 }
  0xb8   : > { %995 = vmatpush.xpose.msra.mxu2 %v728_v20  ;;  %996 = vmatpush.xpose.msra.mxu3 %v728_v20  ;;  %v705_v16 = vld [vmem:[%s1678_s27 + $0x38] sm:$0xff]  ;;  %s2261_s27 = sld [smem:[#allocation14_spill]] }
  0xb9   : > { %735 = vmatpush.xpose.msra.mxu0 %v728_v20  ;;  %994 = vmatpush.xpose.msra.mxu1 %v728_v20 }
  0xbc   : > { %998 = vmatpush.xpose.msra.mxu2 %v727_v39  ;;  %999 = vmatpush.xpose.msra.mxu3 %v727_v39 }
  0xbd   : > { %736 = vmatpush.xpose.msra.mxu0 %v727_v39  ;;  %997 = vmatpush.xpose.msra.mxu1 %v727_v39 }
  0xbe   : > { %s990_s15 = sshll.u32 %s2261_s27, 5  ;;  %s1320_s27 = scalar_lea.hbm %s2262_s11, 512 }
  0xbf   : > { %s827_s25 = sadd.s32 %s1438_s26, %s990_s15  ;;  %s830_s26 = sshll.u32 %s1702_s30, 4  ;;  %s831_s26 = int_to_ptr.vmem [resolvable:$true] %s830_s26 }
  0xc0   : > { %1001 = vmatpush.xpose.msra.mxu2 %v726_v23  ;;  %1002 = vmatpush.xpose.msra.mxu3 %v726_v23  ;;  %s985_s24 = sshll.u32 %s827_s25, 3 }
  0xc1   : > { %737 = vmatpush.xpose.msra.mxu0 %v726_v23  ;;  %1000 = vmatpush.xpose.msra.mxu1 %v726_v23  ;;  %s829_s20 = scalar_lea.hbm %s2262_s11, %s985_s24 }
  0xc2   : > { %s832_s8 = sshll.u32 %s829_s20, 4  ;;  %s833_s8 = int_to_ptr.hbm [resolvable:$true] %s832_s8 }
  0xc3   : > { %s1314_s1 = sshra.s32 %s833_s8, 4  ;;  %s1315_s1 = int_to_ptr.hbm [resolvable:$true] %s1314_s1 }
  0xc4   : > { %1004 = vmatpush.xpose.msra.mxu2 %v725_v25  ;;  %1005 = vmatpush.xpose.msra.mxu3 %v725_v25  ;;  %s1316_s6 = scalar_lea.hbm %s1315_s1, 128  ;;  %p1321_p10 = scmp.lt.s32.totalorder %s1315_s1, %s2262_s11 }
  0xc5   : > { %738 = vmatpush.xpose.msra.mxu0 %v725_v25  ;;  %1003 = vmatpush.xpose.msra.mxu1 %v725_v25  ;;  %p1317_p13 = scmp.ne.s32.totalorder %s1315_s1, %s1316_s6  ;;  %p1322_p0 = scmp.lt.s32.totalorder %s1320_s27, %s1316_s6 }
  0xc7   : > { %p1318_p4 = pnand %p1317_p13, %p1649_p1  ;;  %p1323_p11 = por %p1322_p0, %p1321_p10 }
  0xc8   : > { %1007 = vmatpush.xpose.msra.mxu2 %v724_v1  ;;  %1008 = vmatpush.xpose.msra.mxu3 %v724_v1 }
  0xc9   : > { %739 = vmatpush.xpose.msra.mxu0 %v724_v1  ;;  %1006 = vmatpush.xpose.msra.mxu1 %v724_v1  ;;  %p1319_p6 = pneg %p1318_p4 }
  0xcb   : > { %p1324_p12 = pnand %p1323_p11, %p1319_p6 }
  0xcc   : > { %1010 = vmatpush.xpose.msra.mxu2 %v723_v22  ;;  %1011 = vmatpush.xpose.msra.mxu3 %v723_v22 }
  0xcd   : > { %740 = vmatpush.xpose.msra.mxu0 %v723_v22  ;;  %1009 = vmatpush.xpose.msra.mxu1 %v723_v22 }
  0xd0   : > { %1013 = vmatpush.xpose.msra.mxu2 %v722_v62  ;;  %1014 = vmatpush.xpose.msra.mxu3 %v722_v62 }
  0xd1   : > { %741 = vmatpush.xpose.msra.mxu0 %v722_v62  ;;  %1012 = vmatpush.xpose.msra.mxu1 %v722_v62 }
  0xd4   : > { %1016 = vmatpush.xpose.msra.mxu2 %v721_v17  ;;  %1017 = vmatpush.xpose.msra.mxu3 %v721_v17 }
  0xd5   : > { %742 = vmatpush.xpose.msra.mxu0 %v721_v17  ;;  %1015 = vmatpush.xpose.msra.mxu1 %v721_v17 }
  0xd8   : > { %1019 = vmatpush.xpose.msra.mxu2 %v720_v49  ;;  %1020 = vmatpush.xpose.msra.mxu3 %v720_v49 }
  0xd9   : > { %743 = vmatpush.xpose.msra.mxu0 %v720_v49  ;;  %1018 = vmatpush.xpose.msra.mxu1 %v720_v49 }
  0xdc   : > { %1022 = vmatpush.xpose.msra.mxu2 %v719_v18  ;;  %1023 = vmatpush.xpose.msra.mxu3 %v719_v18 }
  0xdd   : > { %744 = vmatpush.xpose.msra.mxu0 %v719_v18  ;;  %1021 = vmatpush.xpose.msra.mxu1 %v719_v18 }
  0xe0   : > { %1025 = vmatpush.xpose.msra.mxu2 %v718_v40  ;;  %1026 = vmatpush.xpose.msra.mxu3 %v718_v40 }
  0xe1   : > { %745 = vmatpush.xpose.msra.mxu0 %v718_v40  ;;  %1024 = vmatpush.xpose.msra.mxu1 %v718_v40 }
  0xe4   : > { %1028 = vmatpush.xpose.msra.mxu2 %v717_v42  ;;  %1029 = vmatpush.xpose.msra.mxu3 %v717_v42 }
  0xe5   : > { %746 = vmatpush.xpose.msra.mxu0 %v717_v42  ;;  %1027 = vmatpush.xpose.msra.mxu1 %v717_v42 }
  0xe8   : > { %1031 = vmatpush.xpose.msra.mxu2 %v716_v47  ;;  %1032 = vmatpush.xpose.msra.mxu3 %v716_v47 }
  0xe9   : > { %747 = vmatpush.xpose.msra.mxu0 %v716_v47  ;;  %1030 = vmatpush.xpose.msra.mxu1 %v716_v47 }
  0xec   : > { %1034 = vmatpush.xpose.msra.mxu2 %v715_v61  ;;  %1035 = vmatpush.xpose.msra.mxu3 %v715_v61 }
  0xed   : > { %748 = vmatpush.xpose.msra.mxu0 %v715_v61  ;;  %1033 = vmatpush.xpose.msra.mxu1 %v715_v61 }
  0xf0   : > { %1037 = vmatpush.xpose.msra.mxu2 %v714_v45  ;;  %1038 = vmatpush.xpose.msra.mxu3 %v714_v45 }
  0xf1   : > { %749 = vmatpush.xpose.msra.mxu0 %v714_v45  ;;  %1036 = vmatpush.xpose.msra.mxu1 %v714_v45 }
  0xf3   : > { %774 = vmatmul.f32.vlgmr.msra.gmra.mxu2 %v706_v53  ;;  %786 = vmatmul.f32.vlgmr.msra.gmra.mxu3 %v710_v2 }
  0xf4   : > { %750 = vmatmul.f32.vlgmr.msra.gmra.mxu0 %v698_v12  ;;  %762 = vmatmul.f32.vlgmr.msra.gmra.mxu1 %v702_v32 }
  0xfb   : > { %777 = vmatmul.f32.gmra.mxu2 %v707_v33  ;;  %789 = vmatmul.f32.gmra.mxu3 %v711_v51 }
  0xfc   : > { %753 = vmatmul.f32.gmra.mxu0 %v699_v9  ;;  %765 = vmatmul.f32.gmra.mxu1 %v703_v29 }
 0x103   : > { %780 = vmatmul.f32.gmra.mxu2 %v708_v52  ;;  %792 = vmatmul.f32.gmra.mxu3 %v712_v4 }
 0x104   : > { %756 = vmatmul.f32.gmra.mxu0 %v700_v56  ;;  %768 = vmatmul.f32.gmra.mxu1 %v704_v58 }
 0x10b   : > { %783 = vmatmul.f32.gmra.mxu2 %v709_v59  ;;  %795 = vmatmul.f32.gmra.mxu3 %v713_v10 }
 0x10c   : > { %759 = vmatmul.f32.gmra.mxu0 %v701_v11  ;;  %771 = vmatmul.f32.gmra.mxu1 %v705_v16 }
 0x171   : > { %v751_v63 = vpop.f32.mrf.mxu0  ;;  %v763_v21 = vpop.f32.mrf.mxu1 }
 0x172   : > { %v752_v3 = vadd.f32 %v1239_v5, %v751_v63  ;;  %v764_v14 = vadd.f32 %v1239_v5, %v763_v21 }
 0x174   : > { %799 = vst [vmem:[%s1702_s30] sm:$0xff] %v752_v3 }
 0x175   : > { %803 = vst [vmem:[%s1702_s30 + $0x20] sm:$0xff] %v764_v14 }
 0x176   : > { %v775_v57 = vpop.f32.mrf.mxu2  ;;  %v787_v15 = vpop.f32.mrf.mxu3 }
 0x177   : > { %v776_v7 = vadd.f32 %v1239_v5, %v775_v57  ;;  %v788_v6 = vadd.f32 %v1239_v5, %v787_v15 }
 0x179   : > { %807 = vst [vmem:[%s1702_s30 + $0x40] sm:$0xff] %v776_v7  ;;  %v754_v24 = vpop.f32.mrf.mxu0  ;;  %v766_v13 = vpop.f32.mrf.mxu1 }
 0x17a   : > { %811 = vst [vmem:[%s1702_s30 + $0x60] sm:$0xff] %v788_v6  ;;  %v755_v28 = vadd.f32 %v1239_v5, %v754_v24  ;;  %v767_v35 = vadd.f32 %v1239_v5, %v766_v13 }
 0x17c   : > { %800 = vst [vmem:[%s1702_s30 + $0x8] sm:$0xff] %v755_v28 }
 0x17d   : > { %804 = vst [vmem:[%s1702_s30 + $0x28] sm:$0xff] %v767_v35 }
 0x17e   : > { %v778_v34 = vpop.f32.mrf.mxu2  ;;  %v790_v36 = vpop.f32.mrf.mxu3 }
 0x17f   : > { %v779_v38 = vadd.f32 %v1239_v5, %v778_v34  ;;  %v791_v41 = vadd.f32 %v1239_v5, %v790_v36 }
 0x181   : > { %808 = vst [vmem:[%s1702_s30 + $0x48] sm:$0xff] %v779_v38  ;;  %v757_v60 = vpop.f32.mrf.mxu0  ;;  %v769_v48 = vpop.f32.mrf.mxu1 }
 0x182   : > { %812 = vst [vmem:[%s1702_s30 + $0x68] sm:$0xff] %v791_v41  ;;  %v758_v44 = vadd.f32 %v1239_v5, %v757_v60  ;;  %v770_v46 = vadd.f32 %v1239_v5, %v769_v48 }
 0x184   : > { %801 = vst [vmem:[%s1702_s30 + $0x10] sm:$0xff] %v758_v44 }
 0x185   : > { %805 = vst [vmem:[%s1702_s30 + $0x30] sm:$0xff] %v770_v46 }
 0x186   : > { %v781_v50 = vpop.f32.mrf.mxu2  ;;  %v793_v54 = vpop.f32.mrf.mxu3 }
 0x187   : > { %v782_v8 = vadd.f32 %v1239_v5, %v781_v50  ;;  %v794_v30 = vadd.f32 %v1239_v5, %v793_v54 }
 0x189   : > { %809 = vst [vmem:[%s1702_s30 + $0x50] sm:$0xff] %v782_v8  ;;  %v760_v55 = vpop.f32.mrf.mxu0  ;;  %v772_v26 = vpop.f32.mrf.mxu1 }
 0x18a   : > { %813 = vst [vmem:[%s1702_s30 + $0x70] sm:$0xff] %v794_v30  ;;  %v761_v19 = vadd.f32 %v1239_v5, %v760_v55  ;;  %v773_v27 = vadd.f32 %v1239_v5, %v772_v26 }
 0x18c   : > { %802 = vst [vmem:[%s1702_s30 + $0x18] sm:$0xff] %v761_v19 }
 0x18d   : > { %806 = vst [vmem:[%s1702_s30 + $0x38] sm:$0xff] %v773_v27 }
 0x18e   : > { %v784_v37 = vpop.f32.mrf.mxu2  ;;  %v796_v43 = vpop.f32.mrf.mxu3 }
 0x18f   : > { %v785_v0 = vadd.f32 %v1239_v5, %v784_v37  ;;  %v797_v31 = vadd.f32 %v1239_v5, %v796_v43 }
 0x191   : > { %810 = vst [vmem:[%s1702_s30 + $0x58] sm:$0xff] %v785_v0 }
 0x192   : > { %814 = vst [vmem:[%s1702_s30 + $0x78] sm:$0xff] %v797_v31 }
 0x193   : > { %1327 = shalt.err (!%p1324_p12)
}
 0x194   : > { %s1454_s4 = smov 128   ;;  %s1455_s30 = smov 256  }
 0x195   : > { %s1456_s24 = smov 8  }
 0x196   : > { %1043 = dma.vmem_to_hbm [thread:$0]  (%p1649_p1), %s831_s26, 2048, %s833_s8, %s816_s23, %s1454_s4, %s1455_s30, %s1456_s24  }
 0x197 PF: > { %p1057_p2 = scmp.ge.s32.totalorder %s1450_s29, 2  ;;  %s847_s9 = sand.u32 1, %s1398_s17  }
 0x198   : > { %s848_s12 = scalar_lea.sflag [#allocation6], %s847_s9 }
 0x199   : > { %p1053_p5 = pnand %p1057_p2, %p1660_p3 }
 0x19b   : > { %p1054_p7 = pneg %p1053_p5 }
 0x19d   : > { %1393 = dma.done.wait (%p1054_p7), %s848_s12, 2048  }
 0x19e   : > { %1395 = vsyncadd (%p1054_p7), %s848_s12, 4294965248  ;;  %s24_s29 = sadd.s32 1, %s1450_s29   ;;  %s2264_s5 = sld [smem:[#allocation13_spill]] }
 0x19f   : > { %p2134_p9 = scmp.ge.s32.totalorder %s24_s29, 6   ;;  %s2265_s24 = sld [smem:[#allocation17_spill]] }
 0x1a0   : > { %s2266_s25 = sld [smem:[#allocation15_spill]]  ;;  %s2270_s17 = smov %s1402_s18 }
 0x1a1   : > { %s2267_s27 = sld [smem:[#allocation16_spill]]  ;;  %s2271_s18 = smov %s1406_s19 }
 0x1a2   : > { %s2268_s14 = sld [smem:[#allocation18_spill]]  ;;  %s2272_s19 = smov %s1657_s10 }
 0x1a3   : > { %s2273_s20 = smov %s1414_s21  ;;  %s2274_s21 = smov %s1418_s22 }
 0x1a4   : > { %s2275_s22 = smov %s1654_s16  ;;  %s2276_s23 = smov %s1426_s0 }
 0x1a5   : > { %s2277_s0 = smov %s2264_s5  ;;  %s2278_s26 = smov %s1446_s28 }
 0x1a6   :  { %23 = sbr.rel (!%p2134_p9) target bundleno = 16 (0x10), region = 101 }
 0x1a8   : > { %s2279_s28 = smov %s2268_s14 }
 0x1ab   :  { %854 = vsyncpa [#allocation5], 1 }
 0x1ac   :  { %856 = vsyncpa [#allocation5 + $0x1], 1 }
 0x1ad   :  { %857 = vsyncpa [#allocation8], 1 }
 0x1ae   :  { %859 = vsyncpa [#allocation8 + $0x1], 1 }
 0x1af   :  { %860 = vsyncpa [#allocation6], 1 }
 0x1b0   :  { %862 = vsyncpa [#allocation6 + $0x1], 1 }

</bundles_post_ra>
